<compile_context>
chip_gen: v6e
topology: v6e:2x2x1
jax: 0.10.0
libtpu: 0.0.40
codegen_flags: <defaults>
</compile_context>

<pallas_src>
import functools

import numpy as np
import jax
import jax.numpy as jnp
from jax.experimental import pallas as pl
from jax.experimental.pallas import tpu as pltpu


# --------------------------------------------------------------------------- #
# Kernels
# --------------------------------------------------------------------------- #
def se_module_kernel(x_ref, p1_ref, p2_ref, o_ref, *, l_true):
    """One (TB, C, Lpad) block: out = x + sigmoid(W2 relu(W1 mean_L(x) + b1) + b2)."""
    c = p1_ref.shape[0] - 1
    cr = p1_ref.shape[1]

    x = x_ref[...]                                   # (TB, C, Lpad) native dtype
    # Global average pool over L.  Padded lanes (if any) are zero, so the sum is
    # exact; divide by the true (unpadded) length.
    xsum = jnp.sum(x, axis=-1)                       # (TB, C)
    mean = xsum.astype(jnp.float32) * (1.0 / l_true)

    p1 = p1_ref[...]                                 # (C+1, Cr) f32 = [W1^T ; b1]
    p2 = p2_ref[...]                                 # (Cr+1, C) f32 = [W2^T ; b2]
    w1t, b1 = p1[:c, :], p1[c:c + 1, :]
    w2t, b2 = p2[:cr, :], p2[cr:cr + 1, :]

    # Gate math in f32 on reduced shapes only; 1x1 convs as real MXU dots.
    h = jnp.maximum(jnp.dot(mean, w1t, preferred_element_type=jnp.float32) + b1, 0.0)
    s = jnp.dot(h, w2t, preferred_element_type=jnp.float32) + b2
    g = jax.nn.sigmoid(s).astype(o_ref.dtype)        # (TB, C)

    # Residual combine in the I/O dtype (f32 stays f32; bf16 stays bf16).
    o_ref[...] = x + g[:, :, None]


def _add_gate_kernel(x_ref, g_ref, o_ref):
    """Two-pass fallback: out = x + g (g precomputed, broadcast over L-tile)."""
    o_ref[...] = x_ref[...] + g_ref[...]


# --------------------------------------------------------------------------- #
# Wrapper-side sizing helpers
# --------------------------------------------------------------------------- #
def _device_budgets():
    """(vmem_limit_bytes, target_block_bytes), generation-aware.

    v5e/v6e (128 MiB physical VMEM): 64 MiB scoped limit, ~2 MiB blocks.
    v7x / unknown (64 MiB physical):  32 MiB scoped limit, ~1 MiB blocks.
    """
    vmem_phys = 64 << 20
    try:
        info = pltpu.get_tpu_info()
        vmem_phys = int(getattr(info, "vmem_capacity_bytes", vmem_phys))
    except Exception:  # be conservative if the query is unavailable
        pass
    if vmem_phys >= (100 << 20):
        return 64 << 20, 2 << 20
    return 32 << 20, 1 << 20


def _choose_tb(n, per_elem_bytes, target_block_bytes, vmem_limit_bytes,
               min_grid_steps=8):
    """Largest divisor of n that fits VMEM, the block target, and keeps >= min(8, n) grid steps.

    Returns None if even one batch element does not fit -> caller uses two-pass.
    """
    budget = int(vmem_limit_bytes * 0.75)
    # 2x double-buffered input + 2x double-buffered output + ~1 compiler temp.
    if 5 * per_elem_bytes > budget:
        return None
    max_tb_for_steps = max(1, n // min(min_grid_steps, n))
    best = 1
    for d in range(1, n + 1):
        if n % d:
            continue
        if d > max_tb_for_steps:
            break
        if d * per_elem_bytes > target_block_bytes:
            break
        if 5 * d * per_elem_bytes > budget:
            break
        best = d
    return best


def _choose_tl(c, lpad, itemsize, target_block_bytes):
    """Lane-tile (multiple of 128 dividing lpad) for the two-pass streaming add."""
    units = lpad // 128
    per_unit = max(1, c * 128 * itemsize)
    t = max(1, min(units, target_block_bytes // per_unit))
    while units % t:
        t -= 1
    return t * 128


def _gate_f32(x, p1, p2):
    """Plain-JAX gate for the two-pass fallback: sigmoid(W2 relu(W1 mean + b1) + b2)."""
    c = p1.shape[0] - 1
    cr = p2.shape[0] - 1
    mean = jnp.mean(x.astype(jnp.float32), axis=-1)            # (N, C)
    h = jnp.maximum(mean @ p1[:c] + p1[c:c + 1], 0.0)           # (N, Cr)
    s = h @ p2[:cr] + p2[cr:cr + 1]                             # (N, C)
    return jax.nn.sigmoid(s)


# --------------------------------------------------------------------------- #
# Public forward
# --------------------------------------------------------------------------- #
def se_module_forward(x, packed_params, *, min_grid_steps=8, core_parallel=False,
                      input_buffer_count=2, force_two_pass=False):
    N, C, L = x.shape
    p1, p2 = packed_params
    cr = p1.shape[1]
    assert p1.shape == (C + 1, cr) and p2.shape == (cr + 1, C), "bad packed params"

    vmem_limit, target_block = _device_budgets()
    itemsize = jnp.dtype(x.dtype).itemsize

    # Lane-dense L: pad with zeros to a multiple of 128 (mean divides by true L).
    lpad = pl.cdiv(L, 128) * 128
    xp = x if lpad == L else jnp.pad(x, ((0, 0), (0, 0), (0, lpad - L)))

    per_elem = C * lpad * itemsize
    tb = None if force_two_pass else _choose_tb(
        N, per_elem, target_block, vmem_limit, min_grid_steps)

    # v7x knob: only CORE_PARALLEL / SUBCORE_PARALLEL change codegen; "parallel"
    # is kept as the portable default (safe on single-TC v5e/v6e).
    batch_sem = pltpu.CORE_PARALLEL if core_parallel else "parallel"

    if tb is not None:
        # ---- single-pass: full (C, Lpad) per batch element, mean computed in-kernel.
        x_spec_kwargs = {}
        if input_buffer_count > 2:
            x_spec_kwargs["pipeline_mode"] = pl.Buffered(input_buffer_count)
        out = pl.pallas_call(
            functools.partial(se_module_kernel, l_true=float(L)),
            out_shape=jax.ShapeDtypeStruct((N, C, lpad), x.dtype),
            grid_spec=pltpu.PrefetchScalarGridSpec(
                num_scalar_prefetch=0,
                grid=(N // tb,),
                in_specs=[
                    pl.BlockSpec((tb, C, lpad), lambda n: (n, 0, 0), **x_spec_kwargs),
                    pl.BlockSpec((C + 1, cr), lambda n: (0, 0)),   # resident params
                    pl.BlockSpec((cr + 1, C), lambda n: (0, 0)),   # resident params
                ],
                out_specs=pl.BlockSpec((tb, C, lpad), lambda n: (n, 0, 0)),
            ),
            compiler_params=pltpu.CompilerParams(
                dimension_semantics=(batch_sem,),
                vmem_limit_bytes=vmem_limit,
            ),
        )(xp, p1, p2)
    else:
        # ---- two-pass fallback: gate in plain JAX (reads x once), then a fully
        # tiled streaming add kernel (L tiled, no full-(C,L) residency needed).
        g = _gate_f32(x, p1, p2).astype(x.dtype)[:, :, None]      # (N, C, 1)
        tl = _choose_tl(C, lpad, itemsize, target_block)
        out = pl.pallas_call(
            _add_gate_kernel,
            out_shape=jax.ShapeDtypeStruct((N, C, lpad), x.dtype),
            grid_spec=pltpu.PrefetchScalarGridSpec(
                num_scalar_prefetch=0,
                grid=(N, lpad // tl),
                in_specs=[
                    pl.BlockSpec((1, C, tl), lambda n, l: (n, 0, l)),
                    pl.BlockSpec((1, C, 1), lambda n, l: (n, 0, 0)),
                ],
                out_specs=pl.BlockSpec((1, C, tl), lambda n, l: (n, 0, l)),
            ),
            compiler_params=pltpu.CompilerParams(
                dimension_semantics=(batch_sem, "parallel"),
                vmem_limit_bytes=vmem_limit,
            ),
        )(xp, g)

    return out if lpad == L else out[..., :L]


# --------------------------------------------------------------------------- #
# Parameters & reference
# --------------------------------------------------------------------------- #
def make_params(key, in_channels, reduction=16):
    cr = max(1, in_channels // reduction)
    k1, k2, k3, k4 = jax.random.split(key, 4)
    # PyTorch Conv1d(k=1) weights: (out, in); biases: (out,)
    w1 = jax.random.normal(k1, (cr, in_channels), jnp.float32) * 0.1
    b1 = jax.random.normal(k2, (cr,), jnp.float32) * 0.1
    w2 = jax.random.normal(k3, (in_channels, cr), jnp.float32) * 0.1
    b2 = jax.random.normal(k4, (in_channels,), jnp.float32) * 0.1
    # Packed slabs: p1 = [W1^T ; b1] (C+1, Cr), p2 = [W2^T ; b2] (Cr+1, C).
    p1 = jnp.concatenate([w1.T, b1[None, :]], axis=0)
    p2 = jnp.concatenate([w2.T, b2[None, :]], axis=0)
    return (p1, p2), (w1, b1, w2, b2)


def reference_forward(x, torch_like_params):
    """Pure-JAX equivalent of the PyTorch SEModule.forward (f32 math)."""
    w1, b1, w2, b2 = torch_like_params
    xf = x.astype(jnp.float32)
    s = jnp.mean(xf, axis=-1, keepdims=True)                               # (N, C, 1)
    s = jnp.einsum("rc,ncl->nrl", w1, s) + b1[None, :, None]
    s = jnp.maximum(s, 0.0)
    s = jnp.einsum("cr,nrl->ncl", w2, s) + b2[None, :, None]
    return (xf + jax.nn.sigmoid(s)).astype(x.dtype)


# --------------------------------------------------------------------------- #
# Self-test
# --------------------------------------------------------------------------- #
def _run_case(key, *, n, c, l, reduction, dtype, tol, force_two_pass=False):
    kx, kp = jax.random.split(key)
    x = jax.random.normal(kx, (n, c, l), jnp.float32).astype(dtype)
    packed, torch_like = make_params(kp, c, reduction)
    out = jax.block_until_ready(
        se_module_forward(x, packed, force_two_pass=force_two_pass))
    ref = reference_forward(x, torch_like)
    np.testing.assert_allclose(np.asarray(out.astype(jnp.float32)),
                               np.asarray(ref.astype(jnp.float32)),
                               rtol=tol, atol=tol)


if __name__ == "__main__":
    key = jax.random.PRNGKey(0)
    k1, k2, k3, k4 = jax.random.split(key, 4)
    # 1) f32, lane-dense L, several grid steps (pipeline steady state).
    _run_case(k1, n=8, c=64, l=256, reduction=16, dtype=jnp.float32, tol=1e-3)
    # 2) Ragged L (not a multiple of 128): exercises the zero-pad lane-dense path.
    _run_case(k2, n=4, c=32, l=100, reduction=4, dtype=jnp.float32, tol=1e-3)
    # 3) bf16 I/O: no full-block f32 cast, f32 gate math on reduced shapes only.
    _run_case(k3, n=8, c=64, l=256, reduction=16, dtype=jnp.bfloat16, tol=6e-2)
    # 4) Forced two-pass fallback (gate in JAX + tiled streaming add kernel).
    _run_case(k4, n=2, c=64, l=256, reduction=16, dtype=jnp.float32, tol=1e-3,
              force_two_pass=True)
    print("KERNEL_OK")
</pallas_src>

<mosaic_0001>
module attributes {stable_mosaic.version = 11 : i64} {
  func.func @se_module_kernel(%arg0: i32, %arg1: memref<1x64x256xf32, #tpu.memory_space<vmem>>, %arg2: memref<65x4xf32, #tpu.memory_space<vmem>>, %arg3: memref<5x64xf32, #tpu.memory_space<vmem>>, %arg4: memref<1x64x256xf32, #tpu.memory_space<vmem>>) attributes {dimension_semantics = [#tpu.dimension_semantics<parallel>], iteration_bounds = array<i64: 8>, scalar_prefetch = 0 : i64, scratch_operands = 0 : i64, tpu.core_type = #tpu.core_type<tc>, window_params = [{transform_indices = @transform_0, window_bounds = array<i64: 1, 64, 256>}, {pipeline_mode = #tpu.pipeline_mode<synchronous>, transform_indices = @transform_1, window_bounds = array<i64: 65, 4>}, {pipeline_mode = #tpu.pipeline_mode<synchronous>, transform_indices = @transform_2, window_bounds = array<i64: 5, 64>}, {transform_indices = @transform_3, window_bounds = array<i64: 1, 64, 256>}]} {
    %c0 = arith.constant 0 : index
    %c0_0 = arith.constant 0 : index
    %c0_1 = arith.constant 0 : index
    %0 = vector.load %arg1[%c0, %c0_0, %c0_1] : memref<1x64x256xf32, #tpu.memory_space<vmem>>, vector<1x64x256xf32>
    %cst = arith.constant dense<0.000000e+00> : vector<1x64xf32>
    %1 = vector.multi_reduction <add>, %0, %cst [2] : vector<1x64x256xf32> to vector<1x64xf32>
    %cst_2 = arith.constant 3.906250e-03 : f32
    %2 = vector.broadcast %cst_2 : f32 to vector<1x64xf32>
    %3 = arith.mulf %1, %2 : vector<1x64xf32>
    %c0_3 = arith.constant 0 : index
    %c0_4 = arith.constant 0 : index
    %4 = vector.load %arg2[%c0_3, %c0_4] : memref<65x4xf32, #tpu.memory_space<vmem>>, vector<65x4xf32>
    %c0_5 = arith.constant 0 : index
    %c0_6 = arith.constant 0 : index
    %5 = vector.load %arg3[%c0_5, %c0_6] : memref<5x64xf32, #tpu.memory_space<vmem>>, vector<5x64xf32>
    %6 = vector.extract_strided_slice %4 {offsets = [0, 0], sizes = [64, 4], strides = [1, 1]} : vector<65x4xf32> to vector<64x4xf32>
    %7 = vector.extract_strided_slice %4 {offsets = [64, 0], sizes = [1, 4], strides = [1, 1]} : vector<65x4xf32> to vector<1x4xf32>
    %8 = vector.extract_strided_slice %5 {offsets = [0, 0], sizes = [4, 64], strides = [1, 1]} : vector<5x64xf32> to vector<4x64xf32>
    %9 = vector.extract_strided_slice %5 {offsets = [4, 0], sizes = [1, 64], strides = [1, 1]} : vector<5x64xf32> to vector<1x64xf32>
    %cst_7 = arith.constant dense<0.000000e+00> : vector<1x4xf32>
    %10 = tpu.matmul %3, %6, %cst_7 {dimension_numbers = #tpu.dot_dimension_numbers<[1], [0], [0], [1], [0, 0, 1, 1], [], []>} : vector<1x64xf32>, vector<64x4xf32>, vector<1x4xf32> -> vector<1x4xf32>
    %11 = arith.addf %10, %7 : vector<1x4xf32>
    %cst_8 = arith.constant 0.000000e+00 : f32
    %12 = vector.broadcast %cst_8 : f32 to vector<1x4xf32>
    %13 = arith.maximumf %11, %12 : vector<1x4xf32>
    %cst_9 = arith.constant dense<0.000000e+00> : vector<1x64xf32>
    %14 = tpu.matmul %13, %8, %cst_9 {dimension_numbers = #tpu.dot_dimension_numbers<[1], [0], [0], [1], [0, 0, 1, 1], [], []>} : vector<1x4xf32>, vector<4x64xf32>, vector<1x64xf32> -> vector<1x64xf32>
    %15 = arith.addf %14, %9 : vector<1x64xf32>
    %16 = arith.negf %15 : vector<1x64xf32>
    %17 = math.exp %16 : vector<1x64xf32>
    %cst_10 = arith.constant 1.000000e+00 : f32
    %18 = vector.broadcast %cst_10 : f32 to vector<1x64xf32>
    %19 = arith.addf %18, %17 : vector<1x64xf32>
    %20 = arith.divf %18, %19 : vector<1x64xf32>
    %21 = vector.shape_cast %20 : vector<1x64xf32> to vector<1x64x1xf32>
    %22 = vector.broadcast %21 : vector<1x64x1xf32> to vector<1x64x256xf32>
    %23 = arith.addf %0, %22 : vector<1x64x256xf32>
    %c0_11 = arith.constant 0 : index
    %c0_12 = arith.constant 0 : index
    %c0_13 = arith.constant 0 : index
    %24 = vector.load %arg4[%c0_11, %c0_12, %c0_13] : memref<1x64x256xf32, #tpu.memory_space<vmem>>, vector<1x64x256xf32>
    tpu.vector_store %arg4[%c0_11, %c0_12, %c0_13], %23 {strides = array<i32>} : memref<1x64x256xf32, #tpu.memory_space<vmem>>, vector<1x64x256xf32>,
    return
  }
  func.func @transform_0(%arg0: i32) -> (i32, i32, i32) {
    %c0_i32 = arith.constant 0 : i32
    %c0_i32_0 = arith.constant 0 : i32
    %c0_i32_1 = arith.constant 0 : i32
    return %arg0, %c0_i32, %c0_i32_0 : i32, i32, i32
  }
  func.func @transform_1(%arg0: i32) -> (i32, i32) {
    %c0_i32 = arith.constant 0 : i32
    %c0_i32_0 = arith.constant 0 : i32
    %c0_i32_1 = arith.constant 0 : i32
    return %c0_i32, %c0_i32_0 : i32, i32
  }
  func.func @transform_2(%arg0: i32) -> (i32, i32) {
    %c0_i32 = arith.constant 0 : i32
    %c0_i32_0 = arith.constant 0 : i32
    %c0_i32_1 = arith.constant 0 : i32
    return %c0_i32, %c0_i32_0 : i32, i32
  }
  func.func @transform_3(%arg0: i32) -> (i32, i32, i32) {
    %c0_i32 = arith.constant 0 : i32
    %c0_i32_0 = arith.constant 0 : i32
    %c0_i32_1 = arith.constant 0 : i32
    return %arg0, %c0_i32, %c0_i32_0 : i32, i32, i32
  }
}

</mosaic_0001>

<bundles_post_ra>
// kernel: tpu_custom_call.1
= control target key start
LH: loop header
LB: loop body
LE: loop exit
PB: predicated region body
PF: predicated region fallthrough
CT: control target
= control target key end

     0   :  { %8 = vsyncpa [#allocation3], 0  ;;  %s1138_s0 = inlined_call_operand.hbm [shape: f32[8,64,256], index: 0, kind: input, shape index: {}]   ;;  %s1139_s1 = inlined_call_operand.vmem [shape: f32[65,4], index: 1, kind: input, shape index: {}]   ;;  %s1140_s2 = inlined_call_operand.vmem [shape: f32[5,64], index: 2, kind: input, shape index: {}]   ;;  %s1141_s3 = inlined_call_operand.hbm [shape: f32[8,64,256], index: 3, kind: output, shape index: {}]  }
   0x1   :  { %10 = vsyncpa [#allocation3 + $0x1], 0 }
   0x2   :  { %11 = vsyncpa [#allocation4], 0 }
   0x3   :  { %13 = vsyncpa [#allocation4 + $0x1], 0  ;;  %s857_s12 = smov 0   ;;  %s859_s13 = smov 0  }
   0x4   :  { %s861_s14 = smov 0   ;;  %s863_s15 = smov 0  }
   0x5 LB: > { %s878_s16 = sadd.s32 4294967295, %s827_s15   ;;  %s624_s17 = sadd.s32 4294967294, %s827_s15   ;;  %s827_s15 = sphi %s863_s15, %s1155_s15   ;;  %s823_s14 = sphi %s861_s14, %s1154_s14   ;;  %s819_s13 = sphi %s859_s13, %s1153_s13   ;;  %s815_s12 = sphi %s857_s12, %s1152_s12  }
   0x6   : > { %s882_s18 = sadd.s32 1, %s827_s15   ;;  %s26_s19 = sadd.s32 1, %s823_s14 }
   0x7   : > { %s23_s20 = ssub.s32 %s827_s15, %s882_s18  ;;  %p33_p0 = scmp.ne.s32.totalorder %s823_s14, %s819_s13 }
   0x8   : > { %p24_p1 = scmp.eq.s32.totalorder %s23_s20, 0  ;;  %p34_p2 = scmp.eq.s32.totalorder %s827_s15, 0 }
   0x9   : > { %p39_p3 = scmp.ne.s32.totalorder %s819_s13, %s815_s12  ;;  %p40_p4 = scmp.eq.s32.totalorder %s878_s16, 0 }
   0xa   : > { %s894_s21 = scalar_select %p24_p1, %s823_s14, %s26_s19  }
   0xb   : > { %p896_p5 = por %p34_p2, %p33_p0  ;;  %p900_p6 = por %p40_p4, %p39_p3 }
   0xc   : > { %p105_p7 = scmp.eq.s32.totalorder %s878_s16, 7  ;;  %p111_p8 = scmp.eq.s32.totalorder %s624_s17, 7 }
   0xd   : > { %s1145_s23 = scalar_select %p900_p6, 1, 0 }
   0xe   : > { %p691_p9 = scmp.lt.s32.totalorder %s827_s15, 8  ;;  %p906_p10 = por %p105_p7, %p33_p0 }
   0xf   : > { %p910_p11 = por %p111_p8, %p39_p3  ;;  %s137_s26 = sand.u32 1, %s823_s14  }
  0x10   : > { %s1146_s24 = scalar_select %p906_p10, 1, 0 }
  0x11   : > { %s1147_s25 = scalar_select %p910_p11, 1, 0 }
  0x12   : > { %s642_s27 = sshll.u32 %s827_s15, 11  ;;  %s627_s28 = sshll.u32 %s137_s26, 7 }
  0x13   : > { %s919_s4 = scalar_lea.hbm %s1138_s0, %s642_s27  ;;  %s141_s5 = scalar_lea.vmem [#allocation2], %s627_s28 }
  0x14   : > { %s148_s6 = sshll.u32 %s141_s5, 4  ;;  %p923_p12 = pnand %p691_p9, %p896_p5  ;;  %s927_s6 = int_to_ptr.vmem [resolvable:$true] %s148_s6 }
  0x15   : > { %s929_s8 = scalar_lea.sflag [#allocation3], %s137_s26  ;;  %s735_s9 = scalar_lea.hbm %s919_s4, 2048 }
  0x16   : > { %p736_p13 = scmp.ne.s32.totalorder %s919_s4, %s735_s9  ;;  %p737_p0 = pneg %p923_p12 }
  0x17   : > { %s740_s17 = scalar_lea.hbm %s1138_s0, 16384  ;;  %p741_p3 = scmp.lt.s32.totalorder %s919_s4, %s1138_s0 }
  0x18   : > { %p738_p1 = pnand %p737_p0, %p736_p13  ;;  %p742_p4 = scmp.lt.s32.totalorder %s740_s17, %s735_s9 }
  0x1a   : > { %p739_p2 = pneg %p738_p1  ;;  %p743_p5 = por %p742_p4, %p741_p3 }
  0x1c   : > { %p744_p7 = pnand %p743_p5, %p739_p2 }
  0x1e   : > { %747 = shalt.err (!%p744_p7)
}
  0x1f   : > { %s748_s22 = scalar_lea.vmem %s927_s6, 2048  ;;  %s829_s26 = smov [#allocation2]  }
  0x20   : > { %p749_p8 = scmp.ne.s32.totalorder %s927_s6, %s748_s22  ;;  %s753_s27 = sshll.u32 %s829_s26, 4  ;;  %s754_s27 = int_to_ptr.vmem [resolvable:$false] %s753_s27 }
  0x21   : > { %s755_s28 = scalar_lea.vmem %s754_s27, 4096  ;;  %p756_p1 = scmp.lt.s32.totalorder %s927_s6, %s754_s27 }
  0x22   : > { %p751_p9 = pnand %p749_p8, %p737_p0  ;;  %p757_p11 = scmp.lt.s32.totalorder %s755_s28, %s748_s22 }
  0x24   : > { %p752_p13 = pneg %p751_p9  ;;  %p758_p10 = por %p757_p11, %p756_p1 }
  0x26   : > { %p759_p6 = pnand %p758_p10, %p752_p13 }
  0x28   : > { %762 = shalt.err (!%p759_p6)
}
  0x29   : > { %s830_s29 = smov 256   ;;  %s831_s30 = smov 16  }
  0x2a   : > { %686 = dma.hbm_to_vmem [thread:$0]  (!%p923_p12), %s919_s4, 2048, %s927_s6, %s929_s8, %s830_s29, %s830_s29, %s831_s30  }
  0x2b   : > { %p630_p0 = scmp.ge.s32.totalorder %s827_s15, 1  ;;  %p156_p2 = scmp.lt.s32.totalorder %s827_s15, 9 }
  0x2d   : > { %p157_p3 = pnand %p630_p0, %p156_p2 }
  0x2e   : > { %s953_s5 = sand.u32 (!%p157_p3), 1, %s819_s13   ;;  %p1149_p6 = scmp.ne.s32.totalorder (!%p157_p3), %s1145_s23, 0 }
  0x2f   : > { %160 = sbr.rel (%p157_p3) target bundleno = 785 (0x311), region = 32  ;;  %s631_s9 = sshll.u32 (!%p157_p3), %s953_s5, 7 }
  0x30   : > { %s163_s10 = scalar_lea.sflag (!%p157_p3), [#allocation3], %s953_s5  ;;  %s166_s11 = scalar_lea.vmem (!%p157_p3), [#allocation2], %s631_s9 }
  0x34   : > { %806 = dma.done.wait (%p1149_p6), %s163_s10, 2048  }
  0x35   : > { %808 = vsyncadd (%p1149_p6), %s163_s10, 4294965248  ;;  %v963_v0 = vld [vmem:[%s166_s11] sm:$0xff]  ;;  %v965_v1 = vld [vmem:[%s166_s11 + $0x8] sm:$0xff]  ;;  %v832_v24 = vmov 0.0   ;;  %vm833_vm0 = vmmov 0   ;;  %v255_v33 = vlaneseq  ;;  %vm266_vm1 = vcmask 130112  }
  0x36   : > { %v967_v2 = vld [vmem:[%s166_s11 + $0x20] sm:$0xff]  ;;  %v205_v3 = vadd.f32 %v965_v1, %v963_v0  ;;  %v971_v4 = vld [vmem:[%s166_s11 + $0x28] sm:$0xff]  ;;  %v973_v5 = vld [vmem:[%s166_s11 + $0x10] sm:$0xff]  ;;  %655 = vmatprep.subr.mxu0 %v832_v24  ;;  %674 = vmatprep.subr.mxu1 %v832_v24  ;;  %vm273_vm2 = vcmask 195712   ;;  %vm280_vm3 = vcmask 261312   ;;  %vm287_vm4 = vcmask 326912  }
  0x37   : > { %v975_v6 = vld [vmem:[%s166_s11 + $0x18] sm:$0xff]  ;;  %v211_v7 = vadd.f32 %v971_v4, %v967_v2  ;;  %v979_v8 = vld [vmem:[%s166_s11 + $0x30] sm:$0xff]  ;;  %v987_v12 = vld [vmem:[%s166_s11 + $0x40] sm:$0xff]  ;;  %671 = vmatprep.mubr.msk.f32.mxu0 %vm833_vm0, %v832_v24  ;;  %676 = vmatprep.mubr.msk.f32.mxu1 %vm833_vm0, %v832_v24  ;;  %v256_v34 = vand.u32 127, %v255_v33  ;;  %v1035_v35 = vshrl.u32 %v255_v33, 7  ;;  %vm294_vm5 = vcmask 392512  }
  0x38   : > { %v981_v9 = vld [vmem:[%s166_s11 + $0x38] sm:$0xff]  ;;  %206 = vadd.xlane.f32.xlu0 %v205_v3  ;;  %v208_v10 = vadd.f32 %v975_v6, %v973_v5  ;;  %v989_v13 = vld [vmem:[%s166_s11 + $0x48] sm:$0xff]  ;;  %v991_v14 = vld [vmem:[%s166_s11 + $0x50] sm:$0xff]  ;;  %vm301_vm6 = vcmask 458112   ;;  %vm308_vm7 = vcmask 523712   ;;  %vm310_vm8 = vcmask 523264  }
  0x39   : > { %212 = vadd.xlane.f32.xlu1 %v211_v7  ;;  %v214_v11 = vadd.f32 %v981_v9, %v979_v8  ;;  %v993_v15 = vld [vmem:[%s166_s11 + $0x58] sm:$0xff]  ;;  %v217_v16 = vadd.f32 %v989_v13, %v987_v12  ;;  %v999_v18 = vld [vmem:[%s166_s11 + $0x60] sm:$0xff]  ;;  %v1001_v19 = vld [vmem:[%s166_s11 + $0x68] sm:$0xff]  ;;  %v261_v36 = vadd.s32 4294967288, %v256_v34  ;;  %v268_v38 = vadd.s32 4294967280, %v256_v34  ;;  %s1059_s8 = scalar_lea.vmem [#allocation5], %s631_s9 }
  0x3a   : > { %v220_v17 = vadd.f32 %v993_v15, %v991_v14  ;;  %v1003_v20 = vld [vmem:[%s166_s11 + $0x70] sm:$0xff]  ;;  %v1005_v21 = vld [vmem:[%s166_s11 + $0x78] sm:$0xff]  ;;  %v223_v22 = vadd.f32 %v1001_v19, %v999_v18  ;;  %v242_v27 = vld [vmem:[%s1139_s1 + $0x28] sm:$0xff]  ;;  %v275_v39 = vadd.s32 4294967272, %v256_v34  ;;  %v259_v41 = vsub.s32 %v256_v34, %v1035_v35  ;;  %s643_s9 = sshll.u32 %s878_s16, 11  ;;  %s551_s17 = sshll.u32 %s1059_s8, 4  ;;  %s1092_s17 = int_to_ptr.vmem [resolvable:$true] %s551_s17 }
  0x3b   : > { %v226_v23 = vadd.f32 %v1005_v21, %v1003_v20  ;;  %v244_v25 = vld [vmem:[%s1139_s1 + $0x38] sm:$0xff]  ;;  %v243_v26 = vld [vmem:[%s1139_s1 + $0x30] sm:$0xff]  ;;  %v241_v28 = vld [vmem:[%s1139_s1 + $0x20] sm:$0xff]  ;;  %v264_v43 = vsub.s32 %v261_v36, %v1035_v35  ;;  %v282_v44 = vadd.s32 4294967264, %v256_v34  ;;  %v271_v45 = vsub.s32 %v268_v38, %v1035_v35  ;;  %s1090_s22 = scalar_lea.hbm %s1141_s3, %s643_s9  ;;  %s538_s16 = scalar_lea.sflag [#allocation4], %s953_s5 }
  0x3c   : > { %209 = vadd.xlane.f32.xlu0 %v208_v10  ;;  %656 = vmatpush3.msra.mxu0 %v244_v25  ;;  %v240_v29 = vld [vmem:[%s1139_s1 + $0x18] sm:$0xff]  ;;  %v239_v30 = vld [vmem:[%s1139_s1 + $0x10] sm:$0xff]  ;;  %v238_v31 = vld [vmem:[%s1139_s1 + $0x8] sm:$0xff]  ;;  %v278_v48 = vsub.s32 %v275_v39, %v1035_v35  ;;  %v289_v49 = vadd.s32 4294967256, %v256_v34  ;;  %v296_v56 = vadd.s32 4294967248, %v256_v34  ;;  %v303_v61 = vadd.s32 4294967240, %v256_v34 }
  0x3d   : > { %215 = vadd.xlane.f32.xlu1 %v214_v11  ;;  %657 = vmatprep.subr.mxu0 %v832_v24  ;;  %v237_v32 = vld [vmem:[%s1139_s1] sm:$0xff]  ;;  %v285_v55 = vsub.s32 %v282_v44, %v1035_v35  ;;  %vm391_vm9 = vcmask 1043456   ;;  %vm387_vm10 = vcmask 31744   ;;  %s763_s26 = scalar_lea.vmem %s1092_s17, 2048  ;;  %p1150_p11 = scmp.ne.s32.totalorder %s1146_s24, 0 }
  0x3e   : > { %658 = vmatpush3.msra.mxu0 %v243_v26  ;;  %v292_v60 = vsub.s32 %v289_v49, %v1035_v35  ;;  %v246_v34 = vld [vmem:[%s1140_s2] sm:$0x1f]  ;;  %p764_p10 = scmp.ne.s32.totalorder %s1092_s17, %s763_s26  ;;  %s834_s27 = smov [#allocation5]  }
  0x3f   : > { %659 = vmatprep.subr.mxu0 %v832_v24  ;;  %675 = vmatpush3.msk.msra.mxu1 %vm391_vm9, %v246_v34  ;;  %v245_v36 = vld [vmem:[%s1139_s1 + $0x40] sm:$0x1]  ;;  %s767_s28 = sshll.u32 %s834_s27, 4  ;;  %s768_s28 = int_to_ptr.vmem [resolvable:$false] %s767_s28 }
  0x40   : > { %218 = vadd.xlane.f32.xlu0 %v217_v16  ;;  %660 = vmatpush3.msra.mxu0 %v242_v27  ;;  %p765_p12 = pnand %p764_p10, %p1150_p11  ;;  %s769_s29 = scalar_lea.vmem %s768_s28, 4096 }
  0x41   : > { %221 = vadd.xlane.f32.xlu1 %v220_v17  ;;  %661 = vmatprep.subr.mxu0 %v832_v24  ;;  %v299_v17 = vsub.s32 %v296_v56, %v1035_v35  ;;  %p770_p5 = scmp.lt.s32.totalorder %s1092_s17, %s768_s28  ;;  %p771_p7 = scmp.lt.s32.totalorder %s769_s29, %s763_s26 }
  0x42   : > { %662 = vmatpush3.msra.mxu0 %v241_v28  ;;  %p766_p4 = pneg %p765_p12 }
  0x43   : > { %663 = vmatprep.subr.mxu0 %v832_v24  ;;  %p772_p8 = por %p771_p7, %p770_p5 }
  0x44   : > { %224 = vadd.xlane.f32.xlu0 %v223_v22  ;;  %664 = vmatpush3.msra.mxu0 %v240_v29 }
  0x45   : > { %227 = vadd.xlane.f32.xlu1 %v226_v23  ;;  %665 = vmatprep.subr.mxu0 %v832_v24  ;;  %p773_p9 = pnand %p772_p8, %p766_p4 }
  0x46   : > { %666 = vmatpush3.msra.mxu0 %v239_v30 }
  0x47   : > { %667 = vmatprep.subr.mxu0 %v832_v24 }
  0x48   : > { %668 = vmatpush3.msra.mxu0 %v238_v31 }
  0x49   : > { %669 = vmatprep.subr.mxu0 %v832_v24  ;;  %v306_v24 = vsub.s32 %v303_v61, %v1035_v35 }
  0x4a   : > { %670 = vmatpush3.msra.mxu0 %v237_v32 }
  0xc1   : > { %v207_v37 = vpop.xlane.xlu0 %206 }
  0xc2   : > { %v213_v40 = vpop.xlane.xlu1 %212  ;;  %v229_v42 = vmul.f32 0.00390625, %v207_v37 }
  0xc3   : > { %v231_v46 = vmul.f32 0.00390625, %v213_v40 }
  0xc4   : > { %v260_v53 = vrot.slane %v229_v42, %v259_v41  ;;  %v385_v41 = vrot.slane %v246_v34, 4 }
  0xc5   : > { %v210_v47 = vpop.xlane.xlu0 %209  ;;  %v272_v57 = vrot.slane %v231_v46, %v271_v45 }
  0xc6   : > { %v230_v50 = vmul.f32 0.00390625, %v210_v47  ;;  %v216_v51 = vpop.xlane.xlu1 %215 }
  0xc7   : > { %v232_v52 = vmul.f32 0.00390625, %v216_v51 }
  0xc8   : > { %v265_v54 = vrot.slane %v230_v50, %v264_v43 }
  0xc9   : > { %v279_v58 = vrot.slane %v232_v52, %v278_v48  ;;  %v219_v59 = vpop.xlane.xlu0 %218  ;;  %v472_v48 = vsub.s32 0, %v1035_v35 }
  0xca   : > { %v267_v62 = vsel %vm266_vm1, %v265_v54, %v260_v53  ;;  %v233_v63 = vmul.f32 0.00390625, %v219_v59  ;;  %v222_v3 = vpop.xlane.xlu1 %221 }
  0xcb   : > { %v274_v7 = vsel %vm273_vm2, %v272_v57, %v267_v62  ;;  %v234_v10 = vmul.f32 0.00390625, %v222_v3 }
  0xcc   : > { %v281_v11 = vsel %vm280_vm3, %v279_v58, %v274_v7  ;;  %v286_v16 = vrot.slane %v233_v63, %v285_v55 }
  0xcd   : > { %v293_v22 = vrot.slane %v234_v10, %v292_v60  ;;  %v225_v23 = vpop.xlane.xlu0 %224 }
  0xce   : > { %v288_v25 = vsel %vm287_vm4, %v286_v16, %v281_v11  ;;  %v235_v26 = vmul.f32 0.00390625, %v225_v23  ;;  %v228_v27 = vpop.xlane.xlu1 %227 }
  0xcf   : > { %v236_v28 = vmul.f32 0.00390625, %v228_v27  ;;  %v295_v30 = vsel %vm294_vm5, %v293_v22, %v288_v25 }
  0xd0   : > { %v300_v29 = vrot.slane %v235_v26, %v299_v17 }
  0xd1   : > { %v307_v31 = vrot.slane %v236_v28, %v306_v24 }
  0xd2   : > { %v302_v32 = vsel %vm301_vm6, %v300_v29, %v295_v30 }
  0xd3   : > { %v309_v33 = vsel %vm308_vm7, %v307_v31, %v302_v32 }
  0xd4   : > { %672 = vmatmul.mubr.msk.f32.vlgmr.msra.gmra.mxu0 %vm310_vm8, %v309_v33 }
 0x194   : > { %v379_v37 = vpop.f32.mrf.mxu0 }
 0x195   : > { %v380_v38 = vadd.f32 %v379_v37, %v245_v36 }
 0x196   : > { %v673_v39 = vpop.f32.mrf.mxu0 }
 0x197   : > { %v383_v40 = vmax.f32 %v380_v38, 0.0 }
 0x199   : > { %677 = vmatmul.mubr.msk.f32.vlgmr.msra.gmra.mxu1 %vm387_vm10, %v383_v40 }
 0x259   : > { %v460_v42 = vpop.f32.mrf.mxu1 }
 0x25a   : > { %v461_v43 = vadd.f32 %v460_v42, %v385_v41 }
 0x25b   : > { %v678_v44 = vpop.f32.mrf.mxu1 }
 0x25c   : > { %v636_v45 = vmul.f32 -1.442695, %v461_v43 }
 0x25e   : > { %731 = vpow2.f32 %v636_v45 }
 0x26b   : > { %v732_v46 = vpop.eup %731 }
 0x26c   : > { %v467_v47 = vadd.f32 1.0, %v732_v46 }
 0x26e   : > { %733 = vrcp.f32 %v467_v47 }
 0x27b   : > { %v734_v49 = vpop.eup %733 }
 0x27c   : > { %v473_v50 = vrot.slane %v734_v49, %v472_v48 }
 0x27e   : > { %479 = vbcast.lane.b32.xlu1 %v473_v50, 264  ;;  %475 = vbcast.lane.b32.xlu0 %v473_v50, 256 }
 0x282   : > { %483 = vbcast.lane.b32.xlu1 %v473_v50, 272  ;;  %491 = vbcast.lane.b32.xlu0 %v473_v50, 288 }
 0x286   : > { %487 = vbcast.lane.b32.xlu1 %v473_v50, 280  ;;  %499 = vbcast.lane.b32.xlu0 %v473_v50, 304 }
 0x28a   : > { %495 = vbcast.lane.b32.xlu1 %v473_v50, 296 }
 0x28e   : > { %503 = vbcast.lane.b32.xlu1 %v473_v50, 312 }
 0x2f0   : > { %v480_v51 = vpop.permute.xlu1 %479  ;;  %v476_v52 = vpop.permute.xlu0 %475 }
 0x2f1   : > { %v507_v53 = vadd.f32 %v480_v51, %v973_v5  ;;  %v508_v54 = vadd.f32 %v480_v51, %v975_v6  ;;  %v505_v55 = vadd.f32 %v476_v52, %v963_v0  ;;  %v506_v35 = vadd.f32 %v476_v52, %v965_v1 }
 0x2f3   : > { %523 = vst [vmem:[%s1059_s8 + $0x10] sm:$0xff] %v507_v53  ;;  %524 = vst [vmem:[%s1059_s8 + $0x18] sm:$0xff] %v508_v54 }
 0x2f4   : > { %521 = vst [vmem:[%s1059_s8] sm:$0xff] %v505_v55  ;;  %522 = vst [vmem:[%s1059_s8 + $0x8] sm:$0xff] %v506_v35  ;;  %v484_v5 = vpop.permute.xlu1 %483  ;;  %v492_v0 = vpop.permute.xlu0 %491 }
 0x2f5   : > { %v509_v1 = vadd.f32 %v484_v5, %v967_v2  ;;  %v510_v6 = vadd.f32 %v484_v5, %v971_v4  ;;  %v513_v56 = vadd.f32 %v492_v0, %v987_v12  ;;  %v514_v57 = vadd.f32 %v492_v0, %v989_v13 }
 0x2f7   : > { %525 = vst [vmem:[%s1059_s8 + $0x20] sm:$0xff] %v509_v1  ;;  %526 = vst [vmem:[%s1059_s8 + $0x28] sm:$0xff] %v510_v6 }
 0x2f8   : > { %529 = vst [vmem:[%s1059_s8 + $0x40] sm:$0xff] %v513_v56  ;;  %530 = vst [vmem:[%s1059_s8 + $0x48] sm:$0xff] %v514_v57  ;;  %v488_v58 = vpop.permute.xlu1 %487  ;;  %v500_v59 = vpop.permute.xlu0 %499 }
 0x2f9   : > { %v511_v2 = vadd.f32 %v488_v58, %v979_v8  ;;  %v512_v60 = vadd.f32 %v488_v58, %v981_v9  ;;  %v517_v4 = vadd.f32 %v500_v59, %v999_v18  ;;  %v518_v12 = vadd.f32 %v500_v59, %v1001_v19 }
 0x2fb   : > { %527 = vst [vmem:[%s1059_s8 + $0x30] sm:$0xff] %v511_v2  ;;  %528 = vst [vmem:[%s1059_s8 + $0x38] sm:$0xff] %v512_v60 }
 0x2fc   : > { %533 = vst [vmem:[%s1059_s8 + $0x60] sm:$0xff] %v517_v4  ;;  %534 = vst [vmem:[%s1059_s8 + $0x68] sm:$0xff] %v518_v12  ;;  %v496_v13 = vpop.permute.xlu1 %495 }
 0x2fd   : > { %v515_v61 = vadd.f32 %v496_v13, %v991_v14  ;;  %v516_v62 = vadd.f32 %v496_v13, %v993_v15 }
 0x2ff   : > { %531 = vst [vmem:[%s1059_s8 + $0x50] sm:$0xff] %v515_v61  ;;  %532 = vst [vmem:[%s1059_s8 + $0x58] sm:$0xff] %v516_v62 }
 0x300   : > { %v504_v8 = vpop.permute.xlu1 %503 }
 0x301   : > { %v519_v9 = vadd.f32 %v504_v8, %v1003_v20  ;;  %v520_v14 = vadd.f32 %v504_v8, %v1005_v21 }
 0x303   : > { %535 = vst [vmem:[%s1059_s8 + $0x70] sm:$0xff] %v519_v9  ;;  %536 = vst [vmem:[%s1059_s8 + $0x78] sm:$0xff] %v520_v14 }
 0x304   : > { %776 = shalt.err (!%p773_p9)
}
 0x305   : > { %s777_s30 = scalar_lea.hbm %s1090_s22, 2048  ;;  %s781_s23 = scalar_lea.hbm %s1141_s3, 16384 }
 0x306   : > { %p778_p13 = scmp.ne.s32.totalorder %s1090_s22, %s777_s30  ;;  %p782_p2 = scmp.lt.s32.totalorder %s1090_s22, %s1141_s3 }
 0x307   : > { %p783_p3 = scmp.lt.s32.totalorder %s781_s23, %s777_s30 }
 0x308   : > { %p779_p1 = pnand %p778_p13, %p1150_p11 }
 0x309   : > { %p784_p6 = por %p783_p3, %p782_p2 }
 0x30a   : > { %p780_p0 = pneg %p779_p1 }
 0x30c   : > { %p785_p10 = pnand %p784_p6, %p780_p0 }
 0x30e   : > { %788 = shalt.err (!%p785_p10)
}
 0x30f   : > { %s835_s7 = smov 256   ;;  %s836_s8 = smov 16  }
 0x310   : > { %681 = dma.vmem_to_hbm [thread:$0]  (%p1150_p11), %s1092_s17, 2048, %s1090_s22, %s538_s16, %s835_s7, %s835_s7, %s836_s8  }
 0x311 PF: > { %p692_p12 = scmp.ge.s32.totalorder %s827_s15, 2  ;;  %s566_s9 = sand.u32 1, %s815_s12  }
 0x312   : > { %p1151_p4 = scmp.ne.s32.totalorder %s1147_s25, 0  ;;  %s567_s19 = scalar_lea.sflag [#allocation4], %s566_s9 }
 0x314   : > { %p688_p5 = pnand %p692_p12, %p1151_p4 }
 0x316   : > { %p689_p7 = pneg %p688_p5 }
 0x318   : > { %810 = dma.done.wait (%p689_p7), %s567_s19, 2048  }
 0x319   : > { %812 = vsyncadd (%p689_p7), %s567_s19, 4294965248  ;;  %p16_p8 = scmp.ge.s32.totalorder %s882_s18, 10   ;;  %s1152_s12 = smov %s819_s13 }
 0x31a   : > { %s1153_s13 = smov %s823_s14  ;;  %s1154_s14 = smov %s894_s21 }
 0x31b   : > { %s1155_s15 = smov %s882_s18  ;;  %18 = sbr.rel (!%p16_p8) target bundleno = 5 (0x5), region = 77 }
 0x320   :  { %572 = vsyncpa [#allocation3], 1 }
 0x321   :  { %574 = vsyncpa [#allocation3 + $0x1], 1 }
 0x322   :  { %575 = vsyncpa [#allocation4], 1 }
 0x323   :  { %577 = vsyncpa [#allocation4 + $0x1], 1 }

</bundles_post_ra>
